<compile_context>
chip_gen: v5e
topology: v5e:2x2
jax: 0.10.0
libtpu: 0.0.40
codegen_flags: <defaults>
</compile_context>

<pallas_src>
import functools
import math

import jax
import jax.numpy as jnp
from jax import lax
from jax.experimental import pallas as pl
from jax.experimental.pallas import tpu as pltpu


def _round_up(x, m):
    return ((x + m - 1) // m) * m


def _arcface_kernel(feat_ref, w_ref, rf_ref, rw_ref, label_ref,
                    cos_ref, marg_ref, ip_ref=None, *,
                    scale, cos_m, sin_m, threshold, mte_scaled, tile_c):
    feat = feat_ref[...]          # [TB, D]  bf16 (default) or f32
    w = w_ref[...]                # [TC, D]
    rf = rf_ref[...]              # [TB, 1]  f32 inverse feature norms
    rw = rw_ref[...]              # [1, TC]  f32 inverse class-weight norms
    labels = label_ref[...]       # [TB, 1]  int32

    # Single MXU contraction over the feature dim (== feat @ W.T), f32 accum.
    dn = (((1,), (1,)), ((), ()))
    ip = lax.dot_general(feat, w, dn, preferred_element_type=jnp.float32)
    cos = ip * rf * rw                                     # [TB, TC] f32

    # One-hot for this class tile: local iota vs (label - tile class offset).
    tb, tc = cos.shape
    local_label = labels - pl.program_id(1) * tile_c       # [TB, 1]
    onehot = lax.broadcasted_iota(jnp.int32, (tb, tc), 1) == local_label

    # Margin math restricted to the single target column per row ([TB,1]).
    tcos = jnp.sum(jnp.where(onehot, cos, 0.0), axis=-1, keepdims=True)
    tcos = jnp.clip(tcos, -1.0, 1.0)
    sin_t = jnp.sqrt(jnp.maximum(1.0 - tcos * tcos, 0.0))
    corr_hi = tcos * (scale * cos_m) - sin_t * (scale * sin_m)
    corr_lo = tcos * scale + mte_scaled
    corr = jnp.where(tcos > threshold, corr_hi, corr_lo)   # [TB, 1]

    scaled_cos = cos * scale
    marginal = jnp.where(onehot, corr, scaled_cos)

    cos_ref[...] = cos.astype(cos_ref.dtype)
    marg_ref[...] = marginal.astype(marg_ref.dtype)
    if ip_ref is not None:
        ip_ref[...] = ip.astype(ip_ref.dtype)


def arcface_inner_product(feat, weights, label, *, scale=30.0, margin=0.5,
                          easy_margin=False, return_ip=False,
                          tile_b=None, tile_c=256,
                          matmul_dtype=jnp.bfloat16,
                          out_dtype=jnp.float32,
                          vmem_budget_bytes=40 << 20,
                          weight_buffers=None):
    """Pallas TPU implementation of ArcFaceInnerProduct.forward.

    matmul_dtype=bfloat16 (default) halves feat/weight HBM traffic and uses
    the native MXU path; norms are always computed from the f32 originals.
    tile_b=None picks the largest batch tile that fits the VMEM budget
    (ideally the whole batch -> the weight matrix is streamed once).
    weight_buffers=3 optionally deepens the weight-tile pipeline.
    """
    B, D = feat.shape
    C, Dw = weights.shape
    assert D == Dw, "feature_dim mismatch"

    if easy_margin == -1:
        threshold, out_indicator = -1.0, 0.0
    elif easy_margin is True:
        threshold, out_indicator = 0.0, 0.0
    else:
        threshold, out_indicator = -math.cos(margin), 1.0

    n_out = 3 if return_ip else 2
    in_dtype = jnp.dtype(matmul_dtype) if matmul_dtype is not None else jnp.dtype(jnp.float32)
    in_bytes = in_dtype.itemsize
    out_dtype = jnp.dtype(out_dtype)
    out_bytes_total = 2 * out_dtype.itemsize + (4 if return_ip else 0)

    # Lane-dense class tile; clamp so tiny problems are not over-padded.
    tile_c = _round_up(min(int(tile_c), _round_up(C, 128)), 128)
    wbuf = int(weight_buffers) if weight_buffers else 2

    # Batch tile: biggest that keeps the (double-buffered) working set in budget.
    if tile_b is None:
        fixed = wbuf * tile_c * D * in_bytes + 2 * tile_c * 4
        per_row = 2 * D * in_bytes + 2 * 4 + 2 * 4 + 2 * tile_c * out_bytes_total
        avail = max(vmem_budget_bytes - fixed, per_row * 8)
        tile_b = max((avail // per_row) // 8 * 8, 8)
    tile_b = _round_up(min(int(tile_b), _round_up(B, 8)), 8)

    b_pad = _round_up(B, tile_b)
    c_pad = _round_up(C, tile_c)

    # Exact f32 inverse norms, eps-guarded (padding stays finite / NaN-free).
    feat32 = feat.astype(jnp.float32)
    w32 = weights.astype(jnp.float32)
    eps = 1e-12
    rf = lax.rsqrt(jnp.maximum(jnp.sum(feat32 * feat32, axis=-1, keepdims=True), eps))
    rw = lax.rsqrt(jnp.maximum(jnp.sum(w32 * w32, axis=-1), eps)).reshape(1, C)

    feat_mm = feat32.astype(in_dtype)
    w_mm = w32.astype(in_dtype)
    label2d = label.astype(jnp.int32).reshape(B, 1)

    if b_pad != B:
        feat_mm = jnp.pad(feat_mm, ((0, b_pad - B), (0, 0)))
        rf = jnp.pad(rf, ((0, b_pad - B), (0, 0)))
        label2d = jnp.pad(label2d, ((0, b_pad - B), (0, 0)),
                          constant_values=-1)          # never matches a class
    if c_pad != C:
        w_mm = jnp.pad(w_mm, ((0, c_pad - C), (0, 0)))
        rw = jnp.pad(rw, ((0, 0), (0, c_pad - C)))

    grid = (b_pad // tile_b, c_pad // tile_c)

    kernel = functools.partial(
        _arcface_kernel,
        scale=float(scale),
        cos_m=math.cos(margin),
        sin_m=math.sin(margin),
        threshold=float(threshold),
        mte_scaled=float(scale) * (-float(margin) * math.sin(margin)
                                   * out_indicator),
        tile_c=tile_c)

    out_dtypes = (out_dtype, out_dtype) + ((jnp.float32,) if return_ip else ())
    out_shapes = tuple(jax.ShapeDtypeStruct((b_pad, c_pad), dt) for dt in out_dtypes)
    out_specs = tuple(pl.BlockSpec((tile_b, tile_c), lambda i, j: (i, j))
                      for _ in range(n_out))

    if weight_buffers:
        w_spec = pl.BlockSpec((tile_c, D), lambda i, j: (j, 0),
                              pipeline_mode=pl.Buffered(int(weight_buffers)))
    else:
        w_spec = pl.BlockSpec((tile_c, D), lambda i, j: (j, 0))

    # Explicit scoped-VMEM limit so big-tile configs stay valid on v7x (64 MiB
    # physical) and above the 16/32 MiB defaults on v5e/v6e when needed.
    vmem_est = (2 * tile_b * D * in_bytes + wbuf * tile_c * D * in_bytes
                + 2 * (2 * tile_b + tile_c) * 4
                + 2 * tile_b * tile_c * out_bytes_total)
    vmem_limit = int(min(max(vmem_est + (8 << 20), 32 << 20), 56 << 20))

    cost = pl.CostEstimate(
        flops=2 * b_pad * c_pad * D + 8 * b_pad * c_pad,
        transcendentals=grid[1] * b_pad,
        bytes_accessed=(in_bytes * (b_pad * D + grid[0] * c_pad * D)
                        + 4 * (2 * b_pad + grid[0] * c_pad)
                        + b_pad * c_pad * out_bytes_total))

    outs = pl.pallas_call(
        kernel,
        grid=grid,
        in_specs=[pl.BlockSpec((tile_b, D), lambda i, j: (i, 0)),
                  w_spec,
                  pl.BlockSpec((tile_b, 1), lambda i, j: (i, 0)),
                  pl.BlockSpec((1, tile_c), lambda i, j: (0, j)),
                  pl.BlockSpec((tile_b, 1), lambda i, j: (i, 0))],
        out_specs=out_specs,
        out_shape=out_shapes,
        compiler_params=pltpu.CompilerParams(
            dimension_semantics=("parallel", "parallel"),
            vmem_limit_bytes=vmem_limit),
        cost_estimate=cost,
    )(feat_mm, w_mm, rf, rw, label2d)

    if b_pad == B and c_pad == C:
        return tuple(outs)
    return tuple(o[:B, :C] for o in outs)


def make_xavier_uniform_weights(key, class_num, feature_dim):
    # nn.init.xavier_uniform_ on a [class_num, feature_dim] tensor:
    # fan_in = feature_dim, fan_out = class_num.
    a = math.sqrt(6.0 / (feature_dim + class_num))
    return jax.random.uniform(key, (class_num, feature_dim),
                              minval=-a, maxval=a, dtype=jnp.float32)


def _reference(feat, weights, label, scale, margin, easy_margin=False):
    """Pure-JAX reference of the PyTorch forward (no theta printing)."""
    C = weights.shape[0]
    if easy_margin == -1:
        thr, oi = -1.0, 0.0
    elif easy_margin is True:
        thr, oi = 0.0, 0.0
    else:
        thr, oi = -math.cos(margin), 1.0
    hi = jax.lax.Precision.HIGHEST
    fn = feat / jnp.linalg.norm(feat, axis=-1, keepdims=True)
    wn = weights / jnp.linalg.norm(weights, axis=-1, keepdims=True)
    cos = jnp.matmul(fn, wn.T, precision=hi)
    onehot = jax.nn.one_hot(label, C, dtype=jnp.bool_)
    above = cos > thr
    mt = jnp.where(onehot & above, margin, 0.0)
    mte = jnp.where(onehot & ~above, -margin * math.sin(margin) * oi, 0.0)
    marginal = scale * (jnp.cos(jnp.arccos(jnp.clip(cos, -1.0, 1.0)) + mt) + mte)
    ip = jnp.matmul(feat, weights.T, precision=hi)
    return cos, marginal, ip


if __name__ == "__main__":
    key = jax.random.PRNGKey(0)
    k1, k2, k3, k4, k5, k6 = jax.random.split(key, 6)

    # --- small case (single tile, lane-padded output) -----------------------
    B, D, C = 8, 32, 16
    feat = jax.random.normal(k1, (B, D), dtype=jnp.float32)
    weights = make_xavier_uniform_weights(k2, C, D)
    label = jax.random.randint(k3, (B,), 0, C, dtype=jnp.int32)
    cos_r, marg_r, ip_r = _reference(feat, weights, label, 30.0, 0.5, False)

    # f32-matmul path: tight numerical check.
    cos, marginal, ip = arcface_inner_product(
        feat, weights, label, scale=30.0, margin=0.5, easy_margin=False,
        return_ip=True, matmul_dtype=jnp.float32)
    jax.block_until_ready((cos, marginal, ip))
    assert cos.shape == (B, C) and marginal.shape == (B, C) and ip.shape == (B, C)
    assert jnp.allclose(cos, cos_r, atol=1e-4)
    assert jnp.allclose(marginal, marg_r, atol=1e-3)
    assert jnp.allclose(ip, ip_r, atol=1e-3)

    # Default fast path: bf16 matmul operands, return_ip=False (training path).
    cos2, marg2 = arcface_inner_product(feat, weights, label,
                                        scale=30.0, margin=0.5)
    jax.block_until_ready((cos2, marg2))
    assert jnp.allclose(cos2, cos_r, atol=2e-2)
    assert jnp.allclose(marg2, marg_r, atol=1.0)

    # --- larger case: C padding, whole-batch tile (1-D effective grid) ------
    B2, D2, C2 = 200, 256, 1000
    feat2 = jax.random.normal(k4, (B2, D2), dtype=jnp.float32)
    weights2 = make_xavier_uniform_weights(k5, C2, D2)
    label2 = jax.random.randint(k6, (B2,), 0, C2, dtype=jnp.int32)
    cos3_r, marg3_r, ip3_r = _reference(feat2, weights2, label2, 30.0, 0.5,
                                        False)

    cos3, marg3, ip3 = arcface_inner_product(
        feat2, weights2, label2, scale=30.0, margin=0.5, return_ip=True,
        matmul_dtype=jnp.float32)
    jax.block_until_ready((cos3, marg3, ip3))
    assert jnp.allclose(cos3, cos3_r, atol=1e-4)
    assert jnp.allclose(marg3, marg3_r, atol=1e-3)
    assert jnp.allclose(ip3, ip3_r, atol=1e-3)

    # Default bf16 path with a forced multi-tile batch grid (grid[0] > 1).
    cos4, marg4 = arcface_inner_product(feat2, weights2, label2,
                                        scale=30.0, margin=0.5, tile_b=64)
    jax.block_until_ready((cos4, marg4))
    assert jnp.allclose(cos4, cos3_r, atol=2e-2)
    assert jnp.allclose(marg4, marg3_r, atol=1.0)

    print("KERNEL_OK")
</pallas_src>

<mosaic_0001>
module attributes {stable_mosaic.version = 11 : i64} {
  func.func @_arcface_kernel(%arg0: i32, %arg1: i32, %arg2: memref<8x32xf32, #tpu.memory_space<vmem>>, %arg3: memref<128x32xf32, #tpu.memory_space<vmem>>, %arg4: memref<8x1xf32, #tpu.memory_space<vmem>>, %arg5: memref<1x128xf32, #tpu.memory_space<vmem>>, %arg6: memref<8x1xi32, #tpu.memory_space<vmem>>, %arg7: memref<8x128xf32, #tpu.memory_space<vmem>>, %arg8: memref<8x128xf32, #tpu.memory_space<vmem>>, %arg9: memref<8x128xf32, #tpu.memory_space<vmem>>) attributes {dimension_semantics = [#tpu.dimension_semantics<parallel>, #tpu.dimension_semantics<parallel>], iteration_bounds = array<i64: 1, 1>, scalar_prefetch = 0 : i64, scratch_operands = 0 : i64, tpu.core_type = #tpu.core_type<tc>, window_params = [{transform_indices = @transform_0, window_bounds = array<i64: 8, 32>}, {transform_indices = @transform_1, window_bounds = array<i64: 128, 32>}, {transform_indices = @transform_2, window_bounds = array<i64: 8, 1>}, {transform_indices = @transform_3, window_bounds = array<i64: 1, 128>}, {transform_indices = @transform_4, window_bounds = array<i64: 8, 1>}, {transform_indices = @transform_5, window_bounds = array<i64: 8, 128>}, {transform_indices = @transform_6, window_bounds = array<i64: 8, 128>}, {transform_indices = @transform_7, window_bounds = array<i64: 8, 128>}]} {
    %c0 = arith.constant 0 : index
    %c0_0 = arith.constant 0 : index
    %0 = vector.load %arg2[%c0, %c0_0] : memref<8x32xf32, #tpu.memory_space<vmem>>, vector<8x32xf32>
    %c0_1 = arith.constant 0 : index
    %c0_2 = arith.constant 0 : index
    %1 = vector.load %arg3[%c0_1, %c0_2] : memref<128x32xf32, #tpu.memory_space<vmem>>, vector<128x32xf32>
    %c0_3 = arith.constant 0 : index
    %c0_4 = arith.constant 0 : index
    %2 = vector.load %arg4[%c0_3, %c0_4] : memref<8x1xf32, #tpu.memory_space<vmem>>, vector<8x1xf32>
    %c0_5 = arith.constant 0 : index
    %c0_6 = arith.constant 0 : index
    %3 = vector.load %arg5[%c0_5, %c0_6] : memref<1x128xf32, #tpu.memory_space<vmem>>, vector<1x128xf32>
    %c0_7 = arith.constant 0 : index
    %c0_8 = arith.constant 0 : index
    %4 = vector.load %arg6[%c0_7, %c0_8] : memref<8x1xi32, #tpu.memory_space<vmem>>, vector<8x1xi32>
    %cst = arith.constant dense<0.000000e+00> : vector<8x128xf32>
    %5 = tpu.matmul %0, %1, %cst {dimension_numbers = #tpu.dot_dimension_numbers<[1], [1], [0], [0], [0, 0, 1, 0], [], []>} : vector<8x32xf32>, vector<128x32xf32>, vector<8x128xf32> -> vector<8x128xf32>
    %6 = vector.broadcast %2 : vector<8x1xf32> to vector<8x128xf32>
    %7 = arith.mulf %5, %6 : vector<8x128xf32>
    %8 = vector.broadcast %3 : vector<1x128xf32> to vector<8x128xf32>
    %9 = arith.mulf %7, %8 : vector<8x128xf32>
    %c128_i32 = arith.constant 128 : i32
    %10 = arith.muli %arg1, %c128_i32 : i32
    %11 = vector.broadcast %10 : i32 to vector<8x1xi32>
    %12 = arith.subi %4, %11 : vector<8x1xi32>
    %13 = tpu.iota {dimensions = array<i32: 1>} : vector<8x128xi32>
    %14 = vector.broadcast %12 : vector<8x1xi32> to vector<8x128xi32>
    %15 = arith.cmpi eq, %13, %14 : vector<8x128xi32>
    %cst_9 = arith.constant 0.000000e+00 : f32
    %16 = vector.broadcast %cst_9 : f32 to vector<8x128xf32>
    %17 = arith.select %15, %9, %16 : vector<8x128xi1>, vector<8x128xf32>
    %cst_10 = arith.constant dense<0.000000e+00> : vector<8xf32>
    %18 = vector.multi_reduction <add>, %17, %cst_10 [1] : vector<8x128xf32> to vector<8xf32>
    %19 = vector.shape_cast %18 : vector<8xf32> to vector<8x1xf32>
    %cst_11 = arith.constant -1.000000e+00 : f32
    %cst_12 = arith.constant 1.000000e+00 : f32
    %20 = vector.broadcast %cst_11 : f32 to vector<8x1xf32>
    %21 = arith.maximumf %20, %19 : vector<8x1xf32>
    %22 = vector.broadcast %cst_12 : f32 to vector<8x1xf32>
    %23 = arith.minimumf %22, %21 : vector<8x1xf32>
    %24 = arith.mulf %23, %23 : vector<8x1xf32>
    %cst_13 = arith.constant 1.000000e+00 : f32
    %25 = vector.broadcast %cst_13 : f32 to vector<8x1xf32>
    %26 = arith.subf %25, %24 : vector<8x1xf32>
    %cst_14 = arith.constant 0.000000e+00 : f32
    %27 = vector.broadcast %cst_14 : f32 to vector<8x1xf32>
    %28 = arith.maximumf %26, %27 : vector<8x1xf32>
    %29 = math.sqrt %28 : vector<8x1xf32>
    %cst_15 = arith.constant 26.3274765 : f32
    %30 = vector.broadcast %cst_15 : f32 to vector<8x1xf32>
    %31 = arith.mulf %23, %30 : vector<8x1xf32>
    %cst_16 = arith.constant 14.3827658 : f32
    %32 = vector.broadcast %cst_16 : f32 to vector<8x1xf32>
    %33 = arith.mulf %29, %32 : vector<8x1xf32>
    %34 = arith.subf %31, %33 : vector<8x1xf32>
    %cst_17 = arith.constant 3.000000e+01 : f32
    %35 = vector.broadcast %cst_17 : f32 to vector<8x1xf32>
    %36 = arith.mulf %23, %35 : vector<8x1xf32>
    %cst_18 = arith.constant -7.19138288 : f32
    %37 = vector.broadcast %cst_18 : f32 to vector<8x1xf32>
    %38 = arith.addf %36, %37 : vector<8x1xf32>
    %cst_19 = arith.constant -0.87758255 : f32
    %39 = vector.broadcast %cst_19 : f32 to vector<8x1xf32>
    %40 = arith.cmpf ogt, %23, %39 : vector<8x1xf32>
    %41 = arith.select %40, %34, %38 : vector<8x1xi1>, vector<8x1xf32>
    %cst_20 = arith.constant 3.000000e+01 : f32
    %42 = vector.broadcast %cst_20 : f32 to vector<8x128xf32>
    %43 = arith.mulf %9, %42 : vector<8x128xf32>
    %44 = vector.shape_cast %41 : vector<8x1xf32> to vector<8x1xf32>
    %45 = vector.broadcast %44 : vector<8x1xf32> to vector<8x128xf32>
    %46 = arith.select %15, %45, %43 : vector<8x128xi1>, vector<8x128xf32>
    %c0_21 = arith.constant 0 : index
    %c0_22 = arith.constant 0 : index
    %47 = vector.load %arg7[%c0_21, %c0_22] : memref<8x128xf32, #tpu.memory_space<vmem>>, vector<8x128xf32>
    tpu.vector_store %arg7[%c0_21, %c0_22], %9 {strides = array<i32>} : memref<8x128xf32, #tpu.memory_space<vmem>>, vector<8x128xf32>,
    %c0_23 = arith.constant 0 : index
    %c0_24 = arith.constant 0 : index
    %48 = vector.load %arg8[%c0_23, %c0_24] : memref<8x128xf32, #tpu.memory_space<vmem>>, vector<8x128xf32>
    tpu.vector_store %arg8[%c0_23, %c0_24], %46 {strides = array<i32>} : memref<8x128xf32, #tpu.memory_space<vmem>>, vector<8x128xf32>,
    %c0_25 = arith.constant 0 : index
    %c0_26 = arith.constant 0 : index
    %49 = vector.load %arg9[%c0_25, %c0_26] : memref<8x128xf32, #tpu.memory_space<vmem>>, vector<8x128xf32>
    tpu.vector_store %arg9[%c0_25, %c0_26], %5 {strides = array<i32>} : memref<8x128xf32, #tpu.memory_space<vmem>>, vector<8x128xf32>,
    return
  }
  func.func @transform_0(%arg0: i32, %arg1: i32) -> (i32, i32) {
    %c0_i32 = arith.constant 0 : i32
    %c0_i32_0 = arith.constant 0 : i32
    return %arg0, %c0_i32 : i32, i32
  }
  func.func @transform_1(%arg0: i32, %arg1: i32) -> (i32, i32) {
    %c0_i32 = arith.constant 0 : i32
    %c0_i32_0 = arith.constant 0 : i32
    return %arg1, %c0_i32 : i32, i32
  }
  func.func @transform_2(%arg0: i32, %arg1: i32) -> (i32, i32) {
    %c0_i32 = arith.constant 0 : i32
    %c0_i32_0 = arith.constant 0 : i32
    return %arg0, %c0_i32 : i32, i32
  }
  func.func @transform_3(%arg0: i32, %arg1: i32) -> (i32, i32) {
    %c0_i32 = arith.constant 0 : i32
    %c0_i32_0 = arith.constant 0 : i32
    return %c0_i32, %arg1 : i32, i32
  }
  func.func @transform_4(%arg0: i32, %arg1: i32) -> (i32, i32) {
    %c0_i32 = arith.constant 0 : i32
    %c0_i32_0 = arith.constant 0 : i32
    return %arg0, %c0_i32 : i32, i32
  }
  func.func @transform_5(%arg0: i32, %arg1: i32) -> (i32, i32) {
    %c0_i32 = arith.constant 0 : i32
    return %arg0, %arg1 : i32, i32
  }
  func.func @transform_6(%arg0: i32, %arg1: i32) -> (i32, i32) {
    %c0_i32 = arith.constant 0 : i32
    return %arg0, %arg1 : i32, i32
  }
  func.func @transform_7(%arg0: i32, %arg1: i32) -> (i32, i32) {
    %c0_i32 = arith.constant 0 : i32
    return %arg0, %arg1 : i32, i32
  }
}

</mosaic_0001>

<bundles_post_ra>
// kernel: tpu_custom_call.1
= control target key start
LH: loop header
LB: loop body
LE: loop exit
PB: predicated region body
PF: predicated region fallthrough
CT: control target
= control target key end

     0   :  { %13 = vsyncpa [#allocation3], 0  ;;  %vm45_vm0 = vcmask 261120   ;;  %s449_s0 = inlined_call_operand.vmem [shape: f32[8,32], index: 0, kind: input, shape index: {}]   ;;  %s450_s1 = inlined_call_operand.vmem [shape: f32[128,32], index: 1, kind: input, shape index: {}]   ;;  %s451_s2 = inlined_call_operand.vmem [shape: f32[8,1], index: 2, kind: input, shape index: {}]   ;;  %s452_s3 = inlined_call_operand.vmem [shape: f32[1,128], index: 3, kind: input, shape index: {}]   ;;  %s453_s4 = inlined_call_operand.vmem [shape: s32[8,1], index: 4, kind: input, shape index: {}]   ;;  %s454_s5 = inlined_call_operand.hbm [shape: f32[8,128], index: 5, kind: output, shape index: {0}]   ;;  %s455_s6 = inlined_call_operand.hbm [shape: f32[8,128], index: 6, kind: output, shape index: {1}]   ;;  %s456_s7 = inlined_call_operand.hbm [shape: f32[8,128], index: 7, kind: output, shape index: {2}]  }
   0x1   :  { %v41_v0 = vld [vmem:[%s450_s1 + $0x78] sm:$0xff]  ;;  %v40_v1 = vld [vmem:[%s450_s1 + $0x70] sm:$0xff] }
   0x2   :  { %215 = vmatpush.xpose.msk.msra.mxu0 %vm45_vm0, %v41_v0 }
   0x3   :  { %14 = vsyncpa [#allocation5], 0  ;;  %v39_v2 = vld [vmem:[%s450_s1 + $0x68] sm:$0xff]  ;;  %v38_v3 = vld [vmem:[%s450_s1 + $0x60] sm:$0xff]  ;;  %v317_v8 = vmov 0   ;;  %v130_v21 = vlaneseq  ;;  %s175_s16 = sshll.u32 %s454_s5, 4  ;;  %s176_s16 = int_to_ptr.hbm [resolvable:$true] %s175_s16 }
   0x4   :  { %v37_v4 = vld [vmem:[%s450_s1 + $0x58] sm:$0xff]  ;;  %v36_v5 = vld [vmem:[%s450_s1 + $0x50] sm:$0xff]  ;;  %v35_v6 = vld [vmem:[%s450_s1 + $0x48] sm:$0xff]  ;;  %237 = vset.pattern.permute.xlu0 %v317_v8  ;;  %s318_s17 = smov [#allocation2]   ;;  %s186_s21 = sshll.u32 %s455_s6, 4  ;;  %s187_s21 = int_to_ptr.hbm [resolvable:$true] %s186_s21 }
   0x5   :  { %v34_v7 = vld [vmem:[%s450_s1 + $0x40] sm:$0xff]  ;;  %v33_v10 = vld [vmem:[%s450_s1 + $0x38] sm:$0xff]  ;;  %v32_v11 = vld [vmem:[%s450_s1 + $0x30] sm:$0xff]  ;;  %v131_v23 = vand.u32 127, %v130_v21  ;;  %s173_s18 = sshll.u32 %s318_s17, 4  ;;  %s320_s22 = smov [#allocation6]   ;;  %s174_s18 = int_to_ptr.vmem [resolvable:$true] %s173_s18 }
   0x6   :  { %216 = vmatpush.xpose.msk.msra.mxu0 %vm45_vm0, %v40_v1  ;;  %v42_v9 = vld [vmem:[%s451_s2] sm:$0xff]  ;;  %v31_v13 = vld [vmem:[%s450_s1 + $0x28] sm:$0xff]  ;;  %v29_v15 = vld [vmem:[%s450_s1 + $0x18] sm:$0xff]  ;;  %s195_s23 = sshll.u32 %s320_s22, 4  ;;  %s197_s26 = sshll.u32 %s456_s7, 4  ;;  %s196_s23 = int_to_ptr.vmem [resolvable:$true] %s195_s23  ;;  %s198_s26 = int_to_ptr.hbm [resolvable:$true] %s197_s26 }
   0x7   :  { %119 = vperm.xlu0 %237, %v42_v9   ;;  %v44_v12 = vld [vmem:[%s453_s4] sm:$0xff]  ;;  %v28_v16 = vld [vmem:[%s450_s1 + $0x10] sm:$0xff]  ;;  %v27_v17 = vld [vmem:[%s450_s1 + $0x8] sm:$0xff] }
   0x8   :  { %v30_v14 = vld [vmem:[%s450_s1 + $0x20] sm:$0xff] }
   0x9   :  { %v26_v18 = vld [vmem:[%s450_s1] sm:$0xff] }
   0xa   :  { %217 = vmatpush.xpose.msk.msra.mxu0 %vm45_vm0, %v39_v2  ;;  %v25_v19 = vld [vmem:[%s449_s0] sm:$0xff] }
   0xb   :  { %v238_v22 = vld [vmem:[%s452_s3] ss:$0 sm:$0xff]  ;;  %s319_s3 = smov [#allocation4]  }
   0xc   :  { %s184_s5 = sshll.u32 %s319_s3, 4  ;;  %s185_s5 = int_to_ptr.vmem [resolvable:$true] %s184_s5 }
   0xe   :  { %218 = vmatpush.xpose.msk.msra.mxu0 %vm45_vm0, %v38_v3 }
   0xf   :  { %133 = vperm.xlu0 %237, %v44_v12  }
  0x12   :  { %219 = vmatpush.xpose.msk.msra.mxu0 %vm45_vm0, %v37_v4 }
  0x16   :  { %220 = vmatpush.xpose.msk.msra.mxu0 %vm45_vm0, %v36_v5 }
  0x1a   :  { %221 = vmatpush.xpose.msk.msra.mxu0 %vm45_vm0, %v35_v6 }
  0x1e   :  { %222 = vmatpush.xpose.msk.msra.mxu0 %vm45_vm0, %v34_v7 }
  0x22   :  { %223 = vmatpush.xpose.msk.msra.mxu0 %vm45_vm0, %v33_v10 }
  0x26   :  { %224 = vmatpush.xpose.msk.msra.mxu0 %vm45_vm0, %v32_v11 }
  0x2a   :  { %225 = vmatpush.xpose.msk.msra.mxu0 %vm45_vm0, %v31_v13 }
  0x2e   :  { %226 = vmatpush.xpose.msk.msra.mxu0 %vm45_vm0, %v30_v14 }
  0x32   :  { %227 = vmatpush.xpose.msk.msra.mxu0 %vm45_vm0, %v29_v15 }
  0x36   :  { %228 = vmatpush.xpose.msk.msra.mxu0 %vm45_vm0, %v28_v16 }
  0x3a   :  { %229 = vmatpush.xpose.msk.msra.mxu0 %vm45_vm0, %v27_v17 }
  0x3e   :  { %230 = vmatpush.xpose.msk.msra.mxu0 %vm45_vm0, %v26_v18 }
  0x41   :  { %231 = vmatmul.msk.f32.vlgmr.msra.gmra.mxu0 %vm45_vm0, %v25_v19 }
  0x79   :  { %v120_v20 = vpop.permute.xlu0 %119 }
  0x81   :  { %v134_v25 = vpop.permute.xlu0 %133 }
  0x82   :  { %vm135_vm1 = vcmp.eq.s32.totalorder %v131_v23, %v134_v25 }
  0xbe   :  { %v114_v24 = vpop.f32.mrf.mxu0 }
  0xbf   :  { %v122_v26 = vmul.f32 %v120_v20, %v114_v24  ;;  %167 = vst [vmem:[#allocation6] sm:$0xff] %v114_v24 }
  0xc1   :  { %v126_v27 = vmul.f32 %v238_v22, %v122_v26 }
  0xc3   :  { %165 = vst [vmem:[#allocation2] sm:$0xff] %v126_v27  ;;  %v136_v28 = vsel %vm135_vm1, %v126_v27, 0.0  ;;  %v163_v49 = vmul.f32 30.0, %v126_v27 }
  0xc4   :  { %137 = vadd.xlane.f32.xlu1 %v136_v28  ;;  %178 = dma.vmem_to_hbm [thread:$0]  %s174_s18, 128, %s176_s16, [#allocation3]  }
 0x137   :  { %v138_v29 = vpop.xlane.xlu1 %137 }
 0x138   :  { %v232_v30 = vclamps-f32 %v138_v29, 1.0 }
 0x13a   :  { %v141_v31 = vmul.f32 %v232_v30, %v232_v30  ;;  %v159_v43 = vmul.f32 30.0, %v232_v30  ;;  %v156_v45 = vmul.f32 26.327477, %v232_v30  ;;  %vm161_vm4 = vcmp.gt.f32.partialorder %v232_v30, -0.87758255 }
 0x13c   :  { %v142_v32 = vsub.f32 1.0, %v141_v31  ;;  %v160_v48 = vadd.f32 -7.191383, %v159_v43 }
 0x13e   :  { %v143_v33 = vmax.f32 %v142_v32, 0.0 }
 0x140   :  { %239 = vrsqrt.f32 %v143_v33  ;;  %vm151_vm2 = vcmp.eq.f32.partialorder %v143_v33, inf  ;;  %v154_v41 = vand.u32 2147483648, %v143_v33  ;;  %vm153_vm3 = vcmp.eq.f32.partialorder %v143_v33, 0.0 }
 0x146   :  { %v240_v34 = vpop.eup %239 }
 0x147   :  { %v145_v35 = vmul.f32 %v240_v34, %v143_v33 }
 0x149   :  { %v146_v36 = vmul.f32 %v240_v34, %v145_v35 }
 0x14b   :  { %v147_v37 = vmul.f32 0.5, %v146_v36 }
 0x14d   :  { %v148_v38 = vsub.f32 1.5, %v147_v37 }
 0x14f   :  { %v149_v39 = vmul.f32 %v240_v34, %v148_v38 }
 0x151   :  { %v150_v40 = vmul.f32 %v149_v39, %v143_v33 }
 0x153   :  { %v152_v42 = vsel %vm151_vm2, %v143_v33, %v150_v40 }
 0x154   :  { %v155_v44 = vsel %vm153_vm3, %v154_v41, %v152_v42 }
 0x155   :  { %v157_v46 = vmul.f32 14.382766, %v155_v44 }
 0x157   :  { %v158_v47 = vsub.f32 %v156_v45, %v157_v46 }
 0x159   :  { %v162_v50 = vsel %vm161_vm4, %v158_v47, %v160_v48 }
 0x15a   :  { %v164_v51 = vsel %vm135_vm1, %v162_v50, %v163_v49 }
 0x15b   :  { %166 = vst [vmem:[#allocation4] sm:$0xff] %v164_v51 }
 0x15c   :  { %189 = dma.vmem_to_hbm [thread:$0]  %s185_s5, 128, %s187_s21, [#allocation5]  }
 0x15d   :  { %200 = dma.vmem_to_hbm [thread:$0]  %s196_s23, 128, %s198_s26, [#allocation5]  }
 0x15e   :  { %313 = dma.done.wait [#allocation3], 128  }
 0x15f   :  { %314 = vsyncadd [#allocation3], 4294967168 }
 0x160   :  { %315 = dma.done.wait [#allocation5], 256  }
 0x161   :  { %316 = vsyncadd [#allocation5], 4294967040 }
 0x162   :  { %213 = vsyncpa [#allocation3], 1 }
 0x163   :  { %214 = vsyncpa [#allocation5], 1 }

</bundles_post_ra>
